<compile_context>
chip_gen: v7x
topology: tpu7x:2x2x1
jax: 0.10.0
libtpu: 0.0.40
codegen_flags: <defaults>
</compile_context>

<pallas_src>
import jax
import jax.numpy as jnp
from jax.experimental import pallas as pl
from jax.experimental.pallas import tpu as pltpu


def _conv_relu_kernel(p_ref, w_ref, b_ref, o_ref):
    # p_ref: (K, Lt)     im2col patches, lane axis = folded (batch, spatial)
    # w_ref: (Fout, K)   conv weight in matmul form (resident, constant index_map)
    # b_ref: (Fout, 1)
    # o_ref: (Fout, Lt)
    acc = jnp.dot(w_ref[...], p_ref[...], preferred_element_type=jnp.float32)
    acc = acc + b_ref[...]                       # bias broadcast over lanes
    o_ref[...] = jnp.maximum(acc, 0.0).astype(o_ref.dtype)


def _num_tensorcores():
    """2 for dual-TensorCore chips (v7x, megacore v4/v5p), else 1."""
    try:
        kind = jax.devices()[0].device_kind.lower()
    except Exception:
        return 1
    if "v7" in kind or "v4" in kind or "v5p" in kind:
        return 2
    return 1


def _lane_tile(total_lanes, min_blocks, max_tile=8192):
    """Pick a lane tile: multiple of 128, <= max_tile, >= min_blocks blocks."""
    units = total_lanes // 128               # total_lanes is a multiple of 128
    n_blocks = max(min_blocks, -(-total_lanes // max_tile))
    n_blocks = min(n_blocks, units)
    while units % n_blocks:                  # terminates: units % units == 0
        n_blocks += 1
    return total_lanes // n_blocks


def simple_conv_layer(x_nchw, weight_oihw, bias, stride=(1, 1)):
    """Conv2d (valid padding, arbitrary stride) + ReLU, matching nn.Conv2d defaults."""
    N, C, H, W = x_nchw.shape
    Fout, Cin, KH, KW = weight_oihw.shape
    assert Cin == C
    sh, sw = stride
    OH = (H - KH) // sh + 1
    OW = (W - KW) // sw + 1
    K = Cin * KH * KW
    M = OH * OW
    Mpad = -(-M // 128) * 128                 # round spatial axis up to 128

    # im2col in the wrapper: (N, Cin, KH*KW, OH, OW) -> (N, K, M).
    # K ordering is (cin, kh, kw), matching weight_oihw.reshape(Fout, K).
    cols = [
        x_nchw[:, :, kh:kh + (OH - 1) * sh + 1:sh, kw:kw + (OW - 1) * sw + 1:sw]
        for kh in range(KH) for kw in range(KW)
    ]
    patches = jnp.stack(cols, axis=2).reshape(N, K, M)
    patches = jnp.pad(patches, ((0, 0), (0, 0), (0, Mpad - M)))
    # Fold batch into the lane axis: (K, N*Mpad).  Lane-dense everywhere.
    patches = patches.transpose(1, 0, 2).reshape(K, N * Mpad)

    w2 = weight_oihw.reshape(Fout, K)
    b2 = bias.reshape(Fout, 1)

    total_lanes = N * Mpad
    lt = _lane_tile(total_lanes, min_blocks=_num_tensorcores())
    n_blocks = total_lanes // lt

    itemsize = jnp.dtype(x_nchw.dtype).itemsize
    cost = pl.CostEstimate(
        flops=2 * Fout * K * total_lanes,
        transcendentals=0,
        bytes_accessed=int((K * total_lanes + Fout * K + Fout
                            + Fout * total_lanes) * itemsize),
    )

    out = pl.pallas_call(
        _conv_relu_kernel,
        out_shape=jax.ShapeDtypeStruct((Fout, total_lanes), x_nchw.dtype),
        grid_spec=pltpu.PrefetchScalarGridSpec(
            num_scalar_prefetch=0,
            grid=(n_blocks,),
            in_specs=[
                pl.BlockSpec((K, lt), lambda i: (0, i)),     # lane-tiled patches
                pl.BlockSpec((Fout, K), lambda i: (0, 0)),   # shared weight
                pl.BlockSpec((Fout, 1), lambda i: (0, 0)),   # shared bias
            ],
            out_specs=pl.BlockSpec((Fout, lt), lambda i: (0, i)),
        ),
        compiler_params=pltpu.CompilerParams(
            dimension_semantics=("parallel",)),
        cost_estimate=cost,
    )(patches, w2, b2)

    # (Fout, N*Mpad) -> (N, Fout, Mpad) -> drop pad lanes (they hold relu(bias))
    out = out.reshape(Fout, N, Mpad).transpose(1, 0, 2)[:, :, :M]
    return out.reshape(N, Fout, OH, OW)


if __name__ == "__main__":
    # Module config: in_channels=4, number_of_filters=32, filter_size=(3,3), stride=(1,1)
    in_channels = 4
    number_of_filters = 32
    KH, KW = 3, 3
    N, H, W = 2, 16, 16

    key = jax.random.PRNGKey(0)
    kx, kw_, kb = jax.random.split(key, 3)
    x = jax.random.normal(kx, (N, in_channels, H, W), dtype=jnp.float32)
    # Deterministic synthetic parameters (shapes follow nn.Conv2d: OIHW weight, (O,) bias).
    weight = 0.1 * jax.random.normal(
        kw_, (number_of_filters, in_channels, KH, KW), dtype=jnp.float32)
    bias = 0.1 * jax.random.normal(kb, (number_of_filters,), dtype=jnp.float32)

    conv_fn = jax.jit(simple_conv_layer, static_argnames=("stride",))
    out = conv_fn(x, weight, bias, stride=(1, 1))
    out = jax.block_until_ready(out)

    # Reference check against XLA conv (NCHW, valid padding) + ReLU.
    ref = jax.lax.conv_general_dilated(
        x, weight, window_strides=(1, 1), padding="VALID",
        dimension_numbers=("NCHW", "OIHW", "NCHW"))
    ref = jnp.maximum(ref + bias[None, :, None, None], 0.0)
    assert out.shape == (N, number_of_filters, H - KH + 1, W - KW + 1)
    assert jnp.allclose(out, ref, atol=1e-4, rtol=1e-4)

    print("KERNEL_OK")
</pallas_src>

<mosaic_0001>
module attributes {stable_mosaic.version = 11 : i64} {
  func.func @_conv_relu_kernel(%arg0: i32, %arg1: memref<36x512xf32, #tpu.memory_space<vmem>>, %arg2: memref<32x36xf32, #tpu.memory_space<vmem>>, %arg3: memref<32x1xf32, #tpu.memory_space<vmem>>, %arg4: memref<32x512xf32, #tpu.memory_space<vmem>>) attributes {dimension_semantics = [#tpu.dimension_semantics<parallel>], iteration_bounds = array<i64: 1>, scalar_prefetch = 0 : i64, scratch_operands = 0 : i64, tpu.core_type = #tpu.core_type<tc>, window_params = [{transform_indices = @transform_0, window_bounds = array<i64: 36, 512>}, {pipeline_mode = #tpu.pipeline_mode<synchronous>, transform_indices = @transform_1, window_bounds = array<i64: 32, 36>}, {pipeline_mode = #tpu.pipeline_mode<synchronous>, transform_indices = @transform_2, window_bounds = array<i64: 32, 1>}, {transform_indices = @transform_3, window_bounds = array<i64: 32, 512>}]} {
    %c0 = arith.constant 0 : index
    %c0_0 = arith.constant 0 : index
    %0 = vector.load %arg2[%c0, %c0_0] : memref<32x36xf32, #tpu.memory_space<vmem>>, vector<32x36xf32>
    %c0_1 = arith.constant 0 : index
    %c0_2 = arith.constant 0 : index
    %1 = vector.load %arg1[%c0_1, %c0_2] : memref<36x512xf32, #tpu.memory_space<vmem>>, vector<36x512xf32>
    %cst = arith.constant dense<0.000000e+00> : vector<32x512xf32>
    %2 = tpu.matmul %0, %1, %cst {dimension_numbers = #tpu.dot_dimension_numbers<[1], [0], [0], [1], [0, 0, 1, 1], [], []>} : vector<32x36xf32>, vector<36x512xf32>, vector<32x512xf32> -> vector<32x512xf32>
    %c0_3 = arith.constant 0 : index
    %c0_4 = arith.constant 0 : index
    %3 = vector.load %arg3[%c0_3, %c0_4] : memref<32x1xf32, #tpu.memory_space<vmem>>, vector<32x1xf32>
    %4 = vector.broadcast %3 : vector<32x1xf32> to vector<32x512xf32>
    %5 = arith.addf %2, %4 : vector<32x512xf32>
    %cst_5 = arith.constant 0.000000e+00 : f32
    %6 = vector.broadcast %cst_5 : f32 to vector<32x512xf32>
    %7 = arith.maximumf %5, %6 : vector<32x512xf32>
    %c0_6 = arith.constant 0 : index
    %c0_7 = arith.constant 0 : index
    %8 = vector.load %arg4[%c0_6, %c0_7] : memref<32x512xf32, #tpu.memory_space<vmem>>, vector<32x512xf32>
    tpu.vector_store %arg4[%c0_6, %c0_7], %7 {strides = array<i32>} : memref<32x512xf32, #tpu.memory_space<vmem>>, vector<32x512xf32>,
    return
  }
  func.func @transform_0(%arg0: i32) -> (i32, i32) {
    %c0_i32 = arith.constant 0 : i32
    %c0_i32_0 = arith.constant 0 : i32
    return %c0_i32, %arg0 : i32, i32
  }
  func.func @transform_1(%arg0: i32) -> (i32, i32) {
    %c0_i32 = arith.constant 0 : i32
    %c0_i32_0 = arith.constant 0 : i32
    %c0_i32_1 = arith.constant 0 : i32
    return %c0_i32, %c0_i32_0 : i32, i32
  }
  func.func @transform_2(%arg0: i32) -> (i32, i32) {
    %c0_i32 = arith.constant 0 : i32
    %c0_i32_0 = arith.constant 0 : i32
    %c0_i32_1 = arith.constant 0 : i32
    return %c0_i32, %c0_i32_0 : i32, i32
  }
  func.func @transform_3(%arg0: i32) -> (i32, i32) {
    %c0_i32 = arith.constant 0 : i32
    %c0_i32_0 = arith.constant 0 : i32
    return %c0_i32, %arg0 : i32, i32
  }
}

</mosaic_0001>

<bundles_post_ra>
// kernel: simple_conv_layer.1
= control target key start
LH: loop header
LB: loop body
LE: loop exit
PB: predicated region body
PF: predicated region fallthrough
CT: control target
= control target key end

     0   :  { %v334_v3 = vmov 0.0   ;;  %v335_v8 = vmov 0   ;;  %vm75_vm0 = vcmask 1043456   ;;  %vm62_vm1 = vcmask 293888   ;;  %s508_s0 = inlined_call_operand.vmem [shape: f32[36,512], index: 0, kind: input, shape index: {}]   ;;  %s509_s2 = inlined_call_operand.vmem [shape: f32[32,1], index: 2, kind: input, shape index: {}]   ;;  %s510_s1 = inlined_call_operand.vmem [shape: f32[32,36], index: 1, kind: input, shape index: {}]   ;;  %s511_s3 = inlined_call_operand.vmem [shape: f32[32,512], index: 3, kind: output, shape index: {}]  }
   0x1   :  { %v19_v0 = vld [vmem:[%s508_s0 + $0x8] sm:$0xff]  ;;  %v21_v2 = vld [vmem:[%s508_s0 + $0x18] sm:$0xff]  ;;  %152 = vmatprep.mubr.f32.mxu0 %v334_v3  ;;  %241 = vmatprep.mubr.f32.mxu1 %v334_v3  ;;  %v18_v6 = vld [vmem:[%s508_s0] sm:$0xff] }
   0x2   :  { %v23_v1 = vld [vmem:[%s508_s0 + $0x28] sm:$0xff]  ;;  %v25_v5 = vld [vmem:[%s508_s0 + $0x38] sm:$0xff]  ;;  %v22_v7 = vld [vmem:[%s508_s0 + $0x20] sm:$0xff]  ;;  %332 = vset.pattern.permute.xlu0 %v335_v8  ;;  %333 = vset.pattern.permute.xlu1 %v335_v8 }
   0x3   :  { %v314_v4 = vpack.c.bf16 %v23_v1, %v19_v0  ;;  %v322_v9 = vpack.c.bf16 %v25_v5, %v21_v2  ;;  %v316_v10 = vpack.c.bf16 %v22_v7, %v18_v6  ;;  %v20_v11 = vld [vmem:[%s508_s0 + $0x10] sm:$0xff]  ;;  %v27_v13 = vld [vmem:[%s508_s0 + $0x48] sm:$0xff]  ;;  %v29_v16 = vld [vmem:[%s508_s0 + $0x58] sm:$0xff] }
   0x4   :  { %v24_v12 = vld [vmem:[%s508_s0 + $0x30] sm:$0xff]  ;;  %v31_v15 = vld [vmem:[%s508_s0 + $0x68] sm:$0xff]  ;;  %v33_v17 = vld [vmem:[%s508_s0 + $0x78] sm:$0xff] }
   0x5   :  { %315 = vmatprep.subr.bf16.mxu0 %v314_v4  ;;  %v324_v14 = vpack.c.bf16 %v24_v12, %v20_v11  ;;  %323 = vmatprep.subr.bf16.mxu1 %v322_v9  ;;  %v318_v18 = vpack.c.bf16 %v31_v15, %v27_v13  ;;  %v326_v19 = vpack.c.bf16 %v33_v17, %v29_v16  ;;  %v26_v20 = vld [vmem:[%s508_s0 + $0x40] sm:$0xff]  ;;  %v28_v22 = vld [vmem:[%s508_s0 + $0x50] sm:$0xff]  ;;  %v35_v26 = vld [vmem:[%s508_s0 + $0x88] sm:$0xf] }
   0x6   :  { %317 = vmatpush1.bf16.msra.mxu0 %v316_v10  ;;  %v30_v21 = vld [vmem:[%s508_s0 + $0x60] sm:$0xff]  ;;  %v32_v24 = vld [vmem:[%s508_s0 + $0x70] sm:$0xff]  ;;  %v37_v27 = vld [vmem:[%s508_s0 + $0x98] sm:$0xf] }
   0x7   :  { %325 = vmatpush1.bf16.msra.mxu1 %v324_v14  ;;  %v320_v23 = vpack.c.bf16 %v30_v21, %v26_v20  ;;  %319 = vmatprep.subr.bf16.mxu0 %v318_v18  ;;  %v328_v25 = vpack.c.bf16 %v32_v24, %v28_v22  ;;  %v38_v28 = vld [vmem:[%s509_s2] sm:$0xff]  ;;  %v40_v29 = vld [vmem:[%s509_s2 + $0x10] sm:$0xff]  ;;  %v39_v33 = vld [vmem:[%s509_s2 + $0x8] sm:$0xff] }
   0x8   :  { %327 = vmatprep.subr.bf16.mxu1 %v326_v19  ;;  %v34_v30 = vld [vmem:[%s508_s0 + $0x80] sm:$0xf]  ;;  %v36_v31 = vld [vmem:[%s508_s0 + $0x90] sm:$0xf]  ;;  %44 = vperm.xlu0 %332, %v38_v28   ;;  %v41_v34 = vld [vmem:[%s509_s2 + $0x18] sm:$0xff] }
   0x9   :  { %v14_v32 = vld [vmem:[%s510_s1] sm:$0xff]  ;;  %54 = vperm.xlu1 %333, %v40_v29   ;;  %v15_v35 = vld [vmem:[%s510_s1 + $0x8] sm:$0xff]  ;;  %v16_v36 = vld [vmem:[%s510_s1 + $0x10] sm:$0xff] }
   0xa   :  { %321 = vmatpush1.bf16.msra.mxu0 %v320_v23  ;;  %v17_v37 = vld [vmem:[%s510_s1 + $0x18] sm:$0xff] }
   0xb   :  { %329 = vmatpush1.bf16.msra.mxu1 %v328_v25  ;;  %302 = vmatprep.subr.msk.mxu0 %vm75_vm0, %v35_v26 }
   0xc   :  { %308 = vmatprep.subr.msk.mxu1 %vm75_vm0, %v37_v27  ;;  %49 = vperm.xlu0 %332, %v39_v33  }
   0xd   :  { %59 = vperm.xlu1 %333, %v41_v34  }
   0xe   :  { %303 = vmatpush1.msk.msra.mxu0 %vm75_vm0, %v34_v30 }
   0xf   :  { %309 = vmatpush1.msk.msra.mxu1 %vm75_vm0, %v36_v31  ;;  %304 = vmatmul.mubr.msk.f32.vlgmr.msra.gmra.mrb[0].mxu0 %vm62_vm1, %v14_v32 }
  0x10   :  { %310 = vmatmul.mubr.msk.f32.vlgmr.msra.gmra.mrb[0].mxu1 %vm62_vm1, %v14_v32  ;;  %158 = vmatprep.mubr.f32.mxu0 %v334_v3 }
  0x11   :  { %247 = vmatprep.mubr.f32.mxu1 %v334_v3 }
  0x13   :  { %305 = vmatmul.mubr.msk.f32.gmra.mrb[2].mxu0 %vm62_vm1, %v15_v35 }
  0x14   :  { %311 = vmatmul.mubr.msk.f32.gmra.mrb[2].mxu1 %vm62_vm1, %v15_v35  ;;  %164 = vmatprep.mubr.f32.mxu0 %v334_v3 }
  0x15   :  { %253 = vmatprep.mubr.f32.mxu1 %v334_v3 }
  0x17   :  { %306 = vmatmul.mubr.msk.f32.gmra.mrb[4].mxu0 %vm62_vm1, %v16_v36 }
  0x18   :  { %312 = vmatmul.mubr.msk.f32.gmra.mrb[4].mxu1 %vm62_vm1, %v16_v36  ;;  %170 = vmatprep.mubr.f32.mxu0 %v334_v3 }
  0x19   :  { %259 = vmatprep.mubr.f32.mxu1 %v334_v3 }
  0x1b   :  { %307 = vmatmul.mubr.msk.f32.gmra.mrb[6].mxu0 %vm62_vm1, %v17_v37 }
  0x1c   :  { %313 = vmatmul.mubr.msk.f32.gmra.mrb[6].mxu1 %vm62_vm1, %v17_v37 }
  0x87   :  { %v45_v38 = vpop.permute.xlu0 %44 }
  0x88   :  { %v55_v57 = vpop.permute.xlu1 %54 }
  0x8b   :  { %v50_v46 = vpop.permute.xlu0 %49 }
  0x8c   :  { %v60_v11 = vpop.permute.xlu1 %59 }
  0xe2   :  { %v154_v39 = vpop.f32.mrb[0].mxu0 }
  0xe3   :  { %v155_v40 = vadd.f32 %v154_v39, %v45_v38  ;;  %v243_v41 = vpop.f32.mrb[0].mxu1  ;;  %v156_v42 = vpop.f32.mrb[1].mxu0 }
  0xe4   :  { %v244_v43 = vadd.f32 %v243_v41, %v45_v38  ;;  %v157_v44 = vadd.f32 %v156_v42, %v45_v38  ;;  %v245_v45 = vpop.f32.mrb[1].mxu1 }
  0xe5   :  { %v266_v47 = vmax.f32 %v155_v40, 0.0  ;;  %v246_v48 = vadd.f32 %v245_v45, %v45_v38 }
  0xe6   :  { %v268_v49 = vmax.f32 %v244_v43, 0.0  ;;  %v267_v50 = vmax.f32 %v157_v44, 0.0  ;;  %v160_v51 = vpop.f32.mrb[2].mxu0 }
  0xe7   :  { %282 = vst [vmem:[%s511_s3] sm:$0xff] %v266_v47  ;;  %v269_v52 = vmax.f32 %v246_v48, 0.0  ;;  %v161_v53 = vadd.f32 %v160_v51, %v50_v46  ;;  %v249_v54 = vpop.f32.mrb[2].mxu1  ;;  %v162_v55 = vpop.f32.mrb[3].mxu0 }
  0xe8   :  { %284 = vst [vmem:[%s511_s3 + $0x10] sm:$0xff] %v268_v49  ;;  %283 = vst [vmem:[%s511_s3 + $0x8] sm:$0xff] %v267_v50  ;;  %v250_v56 = vadd.f32 %v249_v54, %v50_v46  ;;  %v163_v58 = vadd.f32 %v162_v55, %v50_v46  ;;  %v251_v59 = vpop.f32.mrb[3].mxu1 }
  0xe9   :  { %285 = vst [vmem:[%s511_s3 + $0x18] sm:$0xff] %v269_v52  ;;  %v270_v60 = vmax.f32 %v161_v53, 0.0  ;;  %v252_v61 = vadd.f32 %v251_v59, %v50_v46 }
  0xea   :  { %v272_v62 = vmax.f32 %v250_v56, 0.0  ;;  %v271_v63 = vmax.f32 %v163_v58, 0.0  ;;  %v166_v0 = vpop.f32.mrb[4].mxu0 }
  0xeb   :  { %286 = vst [vmem:[%s511_s3 + $0x20] sm:$0xff] %v270_v60  ;;  %v273_v1 = vmax.f32 %v252_v61, 0.0  ;;  %v167_v2 = vadd.f32 %v166_v0, %v55_v57  ;;  %v255_v3 = vpop.f32.mrb[4].mxu1  ;;  %v168_v4 = vpop.f32.mrb[5].mxu0 }
  0xec   :  { %288 = vst [vmem:[%s511_s3 + $0x30] sm:$0xff] %v272_v62  ;;  %287 = vst [vmem:[%s511_s3 + $0x28] sm:$0xff] %v271_v63  ;;  %v256_v5 = vadd.f32 %v255_v3, %v55_v57  ;;  %v169_v6 = vadd.f32 %v168_v4, %v55_v57  ;;  %v257_v7 = vpop.f32.mrb[5].mxu1 }
  0xed   :  { %289 = vst [vmem:[%s511_s3 + $0x38] sm:$0xff] %v273_v1  ;;  %v274_v8 = vmax.f32 %v167_v2, 0.0  ;;  %v258_v9 = vadd.f32 %v257_v7, %v55_v57 }
  0xee   :  { %v276_v10 = vmax.f32 %v256_v5, 0.0  ;;  %v275_v12 = vmax.f32 %v169_v6, 0.0  ;;  %v172_v13 = vpop.f32.mrb[6].mxu0 }
  0xef   :  { %290 = vst [vmem:[%s511_s3 + $0x40] sm:$0xff] %v274_v8  ;;  %v277_v14 = vmax.f32 %v258_v9, 0.0  ;;  %v173_v15 = vadd.f32 %v172_v13, %v60_v11  ;;  %v261_v16 = vpop.f32.mrb[6].mxu1  ;;  %v174_v17 = vpop.f32.mrb[7].mxu0 }
  0xf0   :  { %292 = vst [vmem:[%s511_s3 + $0x50] sm:$0xff] %v276_v10  ;;  %291 = vst [vmem:[%s511_s3 + $0x48] sm:$0xff] %v275_v12  ;;  %v262_v18 = vadd.f32 %v261_v16, %v60_v11  ;;  %v175_v19 = vadd.f32 %v174_v17, %v60_v11  ;;  %v263_v20 = vpop.f32.mrb[7].mxu1 }
  0xf1   :  { %293 = vst [vmem:[%s511_s3 + $0x58] sm:$0xff] %v277_v14  ;;  %v278_v21 = vmax.f32 %v173_v15, 0.0  ;;  %v264_v22 = vadd.f32 %v263_v20, %v60_v11 }
  0xf2   :  { %v280_v23 = vmax.f32 %v262_v18, 0.0  ;;  %v279_v24 = vmax.f32 %v175_v19, 0.0 }
  0xf3   :  { %294 = vst [vmem:[%s511_s3 + $0x60] sm:$0xff] %v278_v21  ;;  %v281_v25 = vmax.f32 %v264_v22, 0.0 }
  0xf4   :  { %296 = vst [vmem:[%s511_s3 + $0x70] sm:$0xff] %v280_v23  ;;  %295 = vst [vmem:[%s511_s3 + $0x68] sm:$0xff] %v279_v24 }
  0xf5   :  { %297 = vst [vmem:[%s511_s3 + $0x78] sm:$0xff] %v281_v25 }

</bundles_post_ra>
